<compile_context>
chip_gen: v6e
topology: v6e:2x2x1
jax: 0.10.0
libtpu: 0.0.40
codegen_flags: <defaults>
</compile_context>

<pallas_src>
import functools
import math

import jax
import jax.numpy as jnp
from jax.experimental import pallas as pl
from jax.experimental.pallas import tpu as pltpu


def _round_up(x, m):
    return ((x + m - 1) // m) * m


def _round_down(x, m):
    return (x // m) * m


# ---------------------------------------------------------------------------
# Kernel 1: branch-major projection  XW[b] = x @ W[b], W packed as (6, F, Hp)
#           branch order: [low1, high1, low2, high2, mlp1, mlp2]
# ---------------------------------------------------------------------------
def _project_kernel(x_ref, w_ref, xw_adj_ref, xw_mlp_ref):
    x = x_ref[...]
    for b in range(4):
        xw_adj_ref[b] = jnp.dot(
            x, w_ref[b], preferred_element_type=jnp.float32
        ).astype(xw_adj_ref.dtype)
    for b in range(2):
        xw_mlp_ref[b] = jnp.dot(
            x, w_ref[4 + b], preferred_element_type=jnp.float32
        ).astype(xw_mlp_ref.dtype)


def _project(x, w_stack, *, tm, compute_dtype):
    n_pad, F = x.shape
    Hp = w_stack.shape[2]
    n_i = n_pad // tm
    cbytes = jnp.dtype(compute_dtype).itemsize
    cost = pl.CostEstimate(
        flops=2 * n_pad * F * 6 * Hp,
        transcendentals=0,
        bytes_accessed=n_pad * F * 4 + 6 * F * Hp * 4 + n_pad * 6 * Hp * cbytes)
    return pl.pallas_call(
        _project_kernel,
        grid=(n_i,),
        in_specs=[
            pl.BlockSpec((tm, F), lambda i: (i, 0)),
            pl.BlockSpec((6, F, Hp), lambda i: (0, 0, 0)),   # grid-invariant
        ],
        out_specs=[
            pl.BlockSpec((4, tm, Hp), lambda i: (0, i, 0)),
            pl.BlockSpec((2, tm, Hp), lambda i: (0, i, 0)),
        ],
        out_shape=[
            jax.ShapeDtypeStruct((4, n_pad, Hp), compute_dtype),
            jax.ShapeDtypeStruct((2, n_pad, Hp), compute_dtype),
        ],
        compiler_params=pltpu.CompilerParams(dimension_semantics=("parallel",)),
        cost_estimate=cost,
    )(x, w_stack)


# ---------------------------------------------------------------------------
# Kernel 2: fused HIGCN layer (both ACM-GCN branches + combine), tiled over
#           (row tile i [parallel], adjacency contraction tile k [arbitrary])
# ---------------------------------------------------------------------------
def _attention_combine(out_low, out_high, out_mlp, a_low, a_high, a_mlp,
                       attv_ref, base):
    # (Hp,)-dot as a lane reduction; sigmoid on the (tm, 1) scores.
    z_low = jax.nn.sigmoid(jnp.sum(out_low * a_low, axis=-1, keepdims=True))
    z_high = jax.nn.sigmoid(jnp.sum(out_high * a_high, axis=-1, keepdims=True))
    z_mlp = jax.nn.sigmoid(jnp.sum(out_mlp * a_mlp, axis=-1, keepdims=True))
    # tiny (3,3) attention-mixing matrix, unrolled with scalar SMEM reads.
    logits = []
    for j in range(3):
        logits.append((z_low * attv_ref[base + j]
                       + z_high * attv_ref[base + 3 + j]
                       + z_mlp * attv_ref[base + 6 + j]) * (1.0 / 3.0))
    m = jnp.maximum(jnp.maximum(logits[0], logits[1]), logits[2])
    e0 = jnp.exp(logits[0] - m)
    e1 = jnp.exp(logits[1] - m)
    e2 = jnp.exp(logits[2] - m)
    # EUP approx reciprocal for the softmax denom; fold the 3x recombine scale.
    scale = 3.0 * pl.reciprocal(e0 + e1 + e2, approx=True)
    return (scale * e0) * out_low + (scale * e1) * out_high + (scale * e2) * out_mlp


def _higcn_conv_kernel(adj_ref, xw_adj_ref, xw_mlp_ref, avec_ref, attv_ref,
                       out_ref, acc_ref,
                       *, tk, nd_lambda, apply_relu, xw_resident):
    k = pl.program_id(1)

    @pl.when(k == 0)
    def _init():
        acc_ref[...] = jnp.zeros_like(acc_ref)

    # Per-step work: only the 4 adjacency contractions (HBM-bound on adj reads).
    if xw_resident:
        koff = pl.multiple_of(k * tk, tk)
    for b in range(4):
        if xw_resident:
            xw_b = xw_adj_ref[b, pl.ds(koff, tk), :]     # (tk, Hp), resident XW
        else:
            xw_b = xw_adj_ref[b]                         # (tk, Hp), streamed XW
        acc_ref[b] += jnp.dot(adj_ref[b], xw_b,
                              preferred_element_type=jnp.float32)

    @pl.when(k == pl.num_programs(1) - 1)
    def _finalize():
        out_l1 = jnp.maximum(acc_ref[0], 0.0)
        out_h1 = jnp.maximum(acc_ref[1], 0.0)
        out_l2 = jnp.maximum(acc_ref[2], 0.0)
        out_h2 = jnp.maximum(acc_ref[3], 0.0)
        out_m1 = jnp.maximum(xw_mlp_ref[0].astype(jnp.float32), 0.0)
        out_m2 = jnp.maximum(xw_mlp_ref[1].astype(jnp.float32), 0.0)

        a = avec_ref[...]                                # (6, Hp) attention vecs
        fea1 = _attention_combine(out_l1, out_h1, out_m1,
                                  a[0:1, :], a[1:2, :], a[2:3, :], attv_ref, 0)
        fea2 = _attention_combine(out_l2, out_h2, out_m2,
                                  a[3:4, :], a[4:5, :], a[5:6, :], attv_ref, 9)
        fea = fea1 + nd_lambda * fea2
        if apply_relu:
            fea = jnp.maximum(fea, 0.0)
        out_ref[...] = fea.astype(out_ref.dtype)


# ---------------------------------------------------------------------------
# Parameter packing (branch-major, Hp lane-padded)
# ---------------------------------------------------------------------------
def _pack_layer_params(p1, p2, f_in, Hp):
    def pad_w(w):
        f0, h = w.shape
        return jnp.pad(w.astype(jnp.float32), ((0, f_in - f0), (0, Hp - h)))

    def pad_a(a):
        return jnp.pad(a[:, 0].astype(jnp.float32), (0, Hp - a.shape[0]))

    # branch order: [low1 | high1 | low2 | high2 | mlp1 | mlp2]
    w_stack = jnp.stack([pad_w(p1["w_low"]), pad_w(p1["w_high"]),
                         pad_w(p2["w_low"]), pad_w(p2["w_high"]),
                         pad_w(p1["w_mlp"]), pad_w(p2["w_mlp"])])
    # rows: [a_low1, a_high1, a_mlp1, a_low2, a_high2, a_mlp2]
    a_all = jnp.stack([pad_a(p1["a_low"]), pad_a(p1["a_high"]), pad_a(p1["a_mlp"]),
                       pad_a(p2["a_low"]), pad_a(p2["a_high"]), pad_a(p2["a_mlp"])])
    att_flat = jnp.concatenate([p1["att_vec"].reshape(-1),
                                p2["att_vec"].reshape(-1)]).astype(jnp.float32)
    return w_stack, a_all, att_flat


def _conv_vmem_limit(tm, tk, n_pad, Hp, adj_bytes, cbytes, xw_resident):
    adj = 2 * 4 * tm * tk * adj_bytes                    # double-buffered adj stack
    xw_adj = (4 * n_pad * Hp * cbytes if xw_resident
              else 2 * 4 * tk * Hp * cbytes)
    xw_mlp = 2 * 2 * tm * Hp * cbytes
    out = 2 * tm * Hp * 4
    acc = 4 * tm * Hp * 4
    misc = 6 * Hp * 4 + (1 << 20)
    est = adj + xw_adj + xw_mlp + out + acc + misc
    return int(min(max(est + (4 << 20), 32 << 20), 120 << 20))


# ---------------------------------------------------------------------------
# Layer wrapper
# ---------------------------------------------------------------------------
def higcn_layer(x, adj_stack, p_gcn, p_higcn, *, nd_lambda, apply_relu,
                tm, tk, compute_dtype, xw_resident_budget):
    """One fused HIGCN layer. x: (n_pad, F) f32; adj_stack: (4, n_pad, n_pad).
    Returns the lane-padded (n_pad, Hp) f32 output (padded columns are zero)."""
    n_pad, F = x.shape
    H = p_gcn["w_low"].shape[1]
    Hp = _round_up(H, 128)
    assert n_pad % tm == 0 and n_pad % tk == 0 and tk % tm == 0

    w_stack, a_all, att_flat = _pack_layer_params(p_gcn, p_higcn, F, Hp)

    # Prologue: branch-major projection (f32 matmul; XW stored in compute dtype).
    xw_adj, xw_mlp = _project(x, w_stack, tm=tm, compute_dtype=compute_dtype)

    n_i, n_k = n_pad // tm, n_pad // tk
    adj_bytes = jnp.dtype(adj_stack.dtype).itemsize
    cbytes = jnp.dtype(compute_dtype).itemsize
    xw_resident = (4 * n_pad * Hp * cbytes) <= xw_resident_budget

    if xw_resident:
        xw_adj_spec = pl.BlockSpec(memory_space=pltpu.MemorySpace.VMEM)
    else:
        xw_adj_spec = pl.BlockSpec((4, tk, Hp), lambda i, k: (0, k, 0))

    cost = pl.CostEstimate(
        flops=2 * 4 * n_pad * n_pad * Hp + 32 * n_pad * Hp,
        transcendentals=16 * n_pad,
        bytes_accessed=(4 * n_pad * n_pad * adj_bytes
                        + (1 if xw_resident else n_i) * 4 * n_pad * Hp * cbytes
                        + 2 * n_pad * Hp * cbytes + n_pad * Hp * 4))

    kernel = functools.partial(_higcn_conv_kernel, tk=tk,
                               nd_lambda=float(nd_lambda),
                               apply_relu=bool(apply_relu),
                               xw_resident=xw_resident)
    return pl.pallas_call(
        kernel,
        grid=(n_i, n_k),
        in_specs=[
            pl.BlockSpec((4, tm, tk), lambda i, k: (0, i, k)),   # stacked adjacencies
            xw_adj_spec,                                         # XW (adj branches)
            pl.BlockSpec((2, tm, Hp), lambda i, k: (0, i, 0)),   # XW (mlp branches)
            pl.BlockSpec(memory_space=pltpu.MemorySpace.VMEM),   # a-vectors (6, Hp)
            pl.BlockSpec(memory_space=pltpu.MemorySpace.SMEM),   # att_vec (18,)
        ],
        out_specs=pl.BlockSpec((tm, Hp), lambda i, k: (i, 0)),
        out_shape=jax.ShapeDtypeStruct((n_pad, Hp), jnp.float32),
        scratch_shapes=[pltpu.VMEM((4, tm, Hp), jnp.float32)],
        compiler_params=pltpu.CompilerParams(
            dimension_semantics=("parallel", "arbitrary"),
            vmem_limit_bytes=_conv_vmem_limit(tm, tk, n_pad, Hp, adj_bytes,
                                              cbytes, xw_resident)),
        cost_estimate=cost,
    )(adj_stack, xw_adj, xw_mlp, a_all, att_flat)


def _choose_tiles(N, tm, tk):
    n128 = _round_up(N, 128)
    tk = max(128, min(_round_down(tk, 128), n128))
    tm = max(128, min(_round_down(tm, 128), tk))
    tk = max(tm, _round_down(tk, tm))             # tm divides tk -> padding = tk multiple
    n_pad = _round_up(N, tk)
    # v7x megacore: keep >= 2 row tiles on the parallel axis when possible.
    if n_pad // tm < 2 and n_pad >= 256:
        tm_new = max(128, _round_down(n_pad // 2, 128))
        if tk % tm_new != 0:
            tk = tm_new
            n_pad = _round_up(N, tk)
        tm = tm_new
    assert n_pad % tm == 0 and n_pad % tk == 0 and tk % tm == 0
    assert tm % 128 == 0 and tk % 128 == 0        # (8,128) + bf16/int8 sublane packing
    return tm, tk, n_pad


def higcn_forward(x, adj_low, adj_high, adj_nd_low, adj_nd_high, params,
                  nd_lambda=1.0, *, tm=512, tk=1024, adj_dtype=jnp.float32,
                  xw_resident_budget=24 << 20):
    """HIGCN forward (abla_type='HIGCN'); dropout omitted (inference)."""
    N = x.shape[0]
    nclass = params["gcn1"]["w_low"].shape[1]
    tm, tk, n_pad = _choose_tiles(N, tm, tk)
    pad = n_pad - N
    adjs = [adj_low, adj_high, adj_nd_low, adj_nd_high]
    if pad:
        x = jnp.pad(x, ((0, pad), (0, 0)))
        adjs = [jnp.pad(a, ((0, pad), (0, pad))) for a in adjs]
    # One stacked adjacency tensor: 1 DMA descriptor per grid step instead of 4.
    # bf16 halves the dominant HBM traffic; accumulation stays f32 in-kernel.
    adj_stack = jnp.stack(adjs).astype(adj_dtype)

    fea = higcn_layer(x.astype(jnp.float32), adj_stack,
                      params["gcn0"], params["higcn0"],
                      nd_lambda=nd_lambda, apply_relu=True,
                      tm=tm, tk=tk, compute_dtype=adj_dtype,
                      xw_resident_budget=xw_resident_budget)
    fea = higcn_layer(fea, adj_stack,
                      params["gcn1"], params["higcn1"],
                      nd_lambda=nd_lambda, apply_relu=False,
                      tm=tm, tk=tk, compute_dtype=adj_dtype,
                      xw_resident_budget=xw_resident_budget)
    return fea[:N, :nclass]


# ---------------------------------------------------------------------------
# Deterministic parameter init (mirrors GraphConvolution.reset_parameters)
# ---------------------------------------------------------------------------
def init_graphconv_params(key, in_features, out_features):
    stdv = 1.0 / math.sqrt(out_features)    # weight_mlp.size(1)
    std_att = 1.0                            # 1/sqrt(att_vec_mlp.size(1)=1)
    std_att_vec = 1.0 / math.sqrt(3.0)       # att_vec.size(1)=3
    ks = jax.random.split(key, 7)
    u = lambda k, shape, s: jax.random.uniform(k, shape, jnp.float32, -s, s)
    return {
        "w_low": u(ks[0], (in_features, out_features), stdv),
        "w_high": u(ks[1], (in_features, out_features), stdv),
        "w_mlp": u(ks[2], (in_features, out_features), stdv),
        "a_low": u(ks[3], (out_features, 1), std_att),
        "a_high": u(ks[4], (out_features, 1), std_att),
        "a_mlp": u(ks[5], (out_features, 1), std_att),
        "att_vec": u(ks[6], (3, 3), std_att_vec),
    }


# ---------------------------------------------------------------------------
# Pure-JAX reference (direct transcription of the PyTorch forward)
# ---------------------------------------------------------------------------
def _acm_ref(x, adj_low, adj_high, p):
    out_low = jax.nn.relu(adj_low @ (x @ p["w_low"]))
    out_high = jax.nn.relu(adj_high @ (x @ p["w_high"]))
    out_mlp = jax.nn.relu(x @ p["w_mlp"])
    s = jnp.concatenate([out_low @ p["a_low"],
                         out_high @ p["a_high"],
                         out_mlp @ p["a_mlp"]], axis=1)
    att = jax.nn.softmax((jax.nn.sigmoid(s) @ p["att_vec"]) / 3.0, axis=1)
    return 3.0 * (att[:, 0:1] * out_low + att[:, 1:2] * out_high
                  + att[:, 2:3] * out_mlp)


def higcn_ref(x, adj_low, adj_high, adj_nd_low, adj_nd_high, params,
              nd_lambda=1.0):
    fea = (_acm_ref(x, adj_low, adj_high, params["gcn0"])
           + nd_lambda * _acm_ref(x, adj_nd_low, adj_nd_high, params["higcn0"]))
    fea = jax.nn.relu(fea)
    fea = (_acm_ref(fea, adj_low, adj_high, params["gcn1"])
           + nd_lambda * _acm_ref(fea, adj_nd_low, adj_nd_high, params["higcn1"]))
    return fea


# ---------------------------------------------------------------------------
if __name__ == "__main__":
    N, NFEAT, NHID, NCLASS = 256, 48, 64, 16
    ND_LAMBDA = 0.5

    key = jax.random.PRNGKey(0)
    k_x, k_al, k_ah, k_nl, k_nh, k_p0, k_p1, k_p2, k_p3 = jax.random.split(key, 9)

    x = jax.random.normal(k_x, (N, NFEAT), jnp.float32)
    # dense (pseudo-normalized) adjacencies standing in for the sparse graphs
    adj_low = jax.random.uniform(k_al, (N, N), jnp.float32) / N
    adj_high = jax.random.uniform(k_ah, (N, N), jnp.float32) / N
    adj_nd_low = jax.random.uniform(k_nl, (N, N), jnp.float32) / N
    adj_nd_high = jax.random.uniform(k_nh, (N, N), jnp.float32) / N

    params = {
        "gcn0": init_graphconv_params(k_p0, NFEAT, NHID),
        "gcn1": init_graphconv_params(k_p1, NHID, NCLASS),
        "higcn0": init_graphconv_params(k_p2, NFEAT, NHID),
        "higcn1": init_graphconv_params(k_p3, NHID, NCLASS),
    }

    ref = jax.block_until_ready(
        higcn_ref(x, adj_low, adj_high, adj_nd_low, adj_nd_high, params,
                  nd_lambda=ND_LAMBDA))

    # f32 path, VMEM-resident XW, 2x2 grid (multi-k accumulation exercised)
    out_f32 = jax.block_until_ready(
        higcn_forward(x, adj_low, adj_high, adj_nd_low, adj_nd_high, params,
                      nd_lambda=ND_LAMBDA, tm=128, tk=128,
                      adj_dtype=jnp.float32))
    assert out_f32.shape == (N, NCLASS)
    assert bool(jnp.allclose(out_f32, ref, rtol=2e-2, atol=2e-3)), \
        "f32 kernel mismatch vs reference"

    # bf16 adjacency / XW path with streamed XW (resident budget forced to 0)
    out_bf16 = jax.block_until_ready(
        higcn_forward(x, adj_low, adj_high, adj_nd_low, adj_nd_high, params,
                      nd_lambda=ND_LAMBDA, adj_dtype=jnp.bfloat16,
                      xw_resident_budget=0))
    assert out_bf16.shape == (N, NCLASS)
    assert bool(jnp.allclose(out_bf16, ref, rtol=6e-2, atol=6e-2)), \
        "bf16 kernel mismatch vs reference"

    print("KERNEL_OK")
</pallas_src>

<mosaic_0001>
module attributes {stable_mosaic.version = 11 : i64} {
  func.func @_project_kernel(%arg0: i32, %arg1: memref<128x48xf32, #tpu.memory_space<vmem>>, %arg2: memref<6x48x128xf32, #tpu.memory_space<vmem>>, %arg3: memref<4x128x128xf32, #tpu.memory_space<vmem>>, %arg4: memref<2x128x128xf32, #tpu.memory_space<vmem>>) attributes {dimension_semantics = [#tpu.dimension_semantics<parallel>], iteration_bounds = array<i64: 2>, scalar_prefetch = 0 : i64, scratch_operands = 0 : i64, tpu.core_type = #tpu.core_type<tc>, window_params = [{transform_indices = @transform_0, window_bounds = array<i64: 128, 48>}, {pipeline_mode = #tpu.pipeline_mode<synchronous>, transform_indices = @transform_1, window_bounds = array<i64: 6, 48, 128>}, {transform_indices = @transform_2, window_bounds = array<i64: 4, 128, 128>}, {transform_indices = @transform_3, window_bounds = array<i64: 2, 128, 128>}]} {
    %c0 = arith.constant 0 : index
    %c0_0 = arith.constant 0 : index
    %0 = vector.load %arg1[%c0, %c0_0] : memref<128x48xf32, #tpu.memory_space<vmem>>, vector<128x48xf32>
    %c0_1 = arith.constant 0 : index
    %c0_2 = arith.constant 0 : index
    %c0_3 = arith.constant 0 : index
    %1 = vector.load %arg2[%c0_1, %c0_2, %c0_3] : memref<6x48x128xf32, #tpu.memory_space<vmem>>, vector<1x48x128xf32>
    %2 = vector.shape_cast %1 : vector<1x48x128xf32> to vector<48x128xf32>
    %cst = arith.constant dense<0.000000e+00> : vector<128x128xf32>
    %3 = tpu.matmul %0, %2, %cst {dimension_numbers = #tpu.dot_dimension_numbers<[1], [0], [0], [1], [0, 0, 1, 1], [], []>} : vector<128x48xf32>, vector<48x128xf32>, vector<128x128xf32> -> vector<128x128xf32>
    %c0_4 = arith.constant 0 : index
    %c0_5 = arith.constant 0 : index
    %c0_6 = arith.constant 0 : index
    %4 = vector.load %arg3[%c0_4, %c0_5, %c0_6] : memref<4x128x128xf32, #tpu.memory_space<vmem>>, vector<1x128x128xf32>
    %5 = vector.shape_cast %4 : vector<1x128x128xf32> to vector<128x128xf32>
    %6 = vector.shape_cast %3 : vector<128x128xf32> to vector<1x128x128xf32>
    tpu.vector_store %arg3[%c0_4, %c0_5, %c0_6], %6 {strides = array<i32>} : memref<4x128x128xf32, #tpu.memory_space<vmem>>, vector<1x128x128xf32>,
    %c1 = arith.constant 1 : index
    %c0_7 = arith.constant 0 : index
    %c0_8 = arith.constant 0 : index
    %7 = vector.load %arg2[%c1, %c0_7, %c0_8] : memref<6x48x128xf32, #tpu.memory_space<vmem>>, vector<1x48x128xf32>
    %8 = vector.shape_cast %7 : vector<1x48x128xf32> to vector<48x128xf32>
    %cst_9 = arith.constant dense<0.000000e+00> : vector<128x128xf32>
    %9 = tpu.matmul %0, %8, %cst_9 {dimension_numbers = #tpu.dot_dimension_numbers<[1], [0], [0], [1], [0, 0, 1, 1], [], []>} : vector<128x48xf32>, vector<48x128xf32>, vector<128x128xf32> -> vector<128x128xf32>
    %c1_10 = arith.constant 1 : index
    %c0_11 = arith.constant 0 : index
    %c0_12 = arith.constant 0 : index
    %10 = vector.load %arg3[%c1_10, %c0_11, %c0_12] : memref<4x128x128xf32, #tpu.memory_space<vmem>>, vector<1x128x128xf32>
    %11 = vector.shape_cast %10 : vector<1x128x128xf32> to vector<128x128xf32>
    %12 = vector.shape_cast %9 : vector<128x128xf32> to vector<1x128x128xf32>
    tpu.vector_store %arg3[%c1_10, %c0_11, %c0_12], %12 {strides = array<i32>} : memref<4x128x128xf32, #tpu.memory_space<vmem>>, vector<1x128x128xf32>,
    %c2 = arith.constant 2 : index
    %c0_13 = arith.constant 0 : index
    %c0_14 = arith.constant 0 : index
    %13 = vector.load %arg2[%c2, %c0_13, %c0_14] : memref<6x48x128xf32, #tpu.memory_space<vmem>>, vector<1x48x128xf32>
    %14 = vector.shape_cast %13 : vector<1x48x128xf32> to vector<48x128xf32>
    %cst_15 = arith.constant dense<0.000000e+00> : vector<128x128xf32>
    %15 = tpu.matmul %0, %14, %cst_15 {dimension_numbers = #tpu.dot_dimension_numbers<[1], [0], [0], [1], [0, 0, 1, 1], [], []>} : vector<128x48xf32>, vector<48x128xf32>, vector<128x128xf32> -> vector<128x128xf32>
    %c2_16 = arith.constant 2 : index
    %c0_17 = arith.constant 0 : index
    %c0_18 = arith.constant 0 : index
    %16 = vector.load %arg3[%c2_16, %c0_17, %c0_18] : memref<4x128x128xf32, #tpu.memory_space<vmem>>, vector<1x128x128xf32>
    %17 = vector.shape_cast %16 : vector<1x128x128xf32> to vector<128x128xf32>
    %18 = vector.shape_cast %15 : vector<128x128xf32> to vector<1x128x128xf32>
    tpu.vector_store %arg3[%c2_16, %c0_17, %c0_18], %18 {strides = array<i32>} : memref<4x128x128xf32, #tpu.memory_space<vmem>>, vector<1x128x128xf32>,
    %c3 = arith.constant 3 : index
    %c0_19 = arith.constant 0 : index
    %c0_20 = arith.constant 0 : index
    %19 = vector.load %arg2[%c3, %c0_19, %c0_20] : memref<6x48x128xf32, #tpu.memory_space<vmem>>, vector<1x48x128xf32>
    %20 = vector.shape_cast %19 : vector<1x48x128xf32> to vector<48x128xf32>
    %cst_21 = arith.constant dense<0.000000e+00> : vector<128x128xf32>
    %21 = tpu.matmul %0, %20, %cst_21 {dimension_numbers = #tpu.dot_dimension_numbers<[1], [0], [0], [1], [0, 0, 1, 1], [], []>} : vector<128x48xf32>, vector<48x128xf32>, vector<128x128xf32> -> vector<128x128xf32>
    %c3_22 = arith.constant 3 : index
    %c0_23 = arith.constant 0 : index
    %c0_24 = arith.constant 0 : index
    %22 = vector.load %arg3[%c3_22, %c0_23, %c0_24] : memref<4x128x128xf32, #tpu.memory_space<vmem>>, vector<1x128x128xf32>
    %23 = vector.shape_cast %22 : vector<1x128x128xf32> to vector<128x128xf32>
    %24 = vector.shape_cast %21 : vector<128x128xf32> to vector<1x128x128xf32>
    tpu.vector_store %arg3[%c3_22, %c0_23, %c0_24], %24 {strides = array<i32>} : memref<4x128x128xf32, #tpu.memory_space<vmem>>, vector<1x128x128xf32>,
    %c4 = arith.constant 4 : index
    %c0_25 = arith.constant 0 : index
    %c0_26 = arith.constant 0 : index
    %25 = vector.load %arg2[%c4, %c0_25, %c0_26] : memref<6x48x128xf32, #tpu.memory_space<vmem>>, vector<1x48x128xf32>
    %26 = vector.shape_cast %25 : vector<1x48x128xf32> to vector<48x128xf32>
    %cst_27 = arith.constant dense<0.000000e+00> : vector<128x128xf32>
    %27 = tpu.matmul %0, %26, %cst_27 {dimension_numbers = #tpu.dot_dimension_numbers<[1], [0], [0], [1], [0, 0, 1, 1], [], []>} : vector<128x48xf32>, vector<48x128xf32>, vector<128x128xf32> -> vector<128x128xf32>
    %c0_28 = arith.constant 0 : index
    %c0_29 = arith.constant 0 : index
    %c0_30 = arith.constant 0 : index
    %28 = vector.load %arg4[%c0_28, %c0_29, %c0_30] : memref<2x128x128xf32, #tpu.memory_space<vmem>>, vector<1x128x128xf32>
    %29 = vector.shape_cast %28 : vector<1x128x128xf32> to vector<128x128xf32>
    %30 = vector.shape_cast %27 : vector<128x128xf32> to vector<1x128x128xf32>
    tpu.vector_store %arg4[%c0_28, %c0_29, %c0_30], %30 {strides = array<i32>} : memref<2x128x128xf32, #tpu.memory_space<vmem>>, vector<1x128x128xf32>,
    %c5 = arith.constant 5 : index
    %c0_31 = arith.constant 0 : index
    %c0_32 = arith.constant 0 : index
    %31 = vector.load %arg2[%c5, %c0_31, %c0_32] : memref<6x48x128xf32, #tpu.memory_space<vmem>>, vector<1x48x128xf32>
    %32 = vector.shape_cast %31 : vector<1x48x128xf32> to vector<48x128xf32>
    %cst_33 = arith.constant dense<0.000000e+00> : vector<128x128xf32>
    %33 = tpu.matmul %0, %32, %cst_33 {dimension_numbers = #tpu.dot_dimension_numbers<[1], [0], [0], [1], [0, 0, 1, 1], [], []>} : vector<128x48xf32>, vector<48x128xf32>, vector<128x128xf32> -> vector<128x128xf32>
    %c1_34 = arith.constant 1 : index
    %c0_35 = arith.constant 0 : index
    %c0_36 = arith.constant 0 : index
    %34 = vector.load %arg4[%c1_34, %c0_35, %c0_36] : memref<2x128x128xf32, #tpu.memory_space<vmem>>, vector<1x128x128xf32>
    %35 = vector.shape_cast %34 : vector<1x128x128xf32> to vector<128x128xf32>
    %36 = vector.shape_cast %33 : vector<128x128xf32> to vector<1x128x128xf32>
    tpu.vector_store %arg4[%c1_34, %c0_35, %c0_36], %36 {strides = array<i32>} : memref<2x128x128xf32, #tpu.memory_space<vmem>>, vector<1x128x128xf32>,
    return
  }
  func.func @transform_0(%arg0: i32) -> (i32, i32) {
    %c0_i32 = arith.constant 0 : i32
    %c0_i32_0 = arith.constant 0 : i32
    return %arg0, %c0_i32 : i32, i32
  }
  func.func @transform_1(%arg0: i32) -> (i32, i32, i32) {
    %c0_i32 = arith.constant 0 : i32
    %c0_i32_0 = arith.constant 0 : i32
    %c0_i32_1 = arith.constant 0 : i32
    %c0_i32_2 = arith.constant 0 : i32
    return %c0_i32, %c0_i32_0, %c0_i32_1 : i32, i32, i32
  }
  func.func @transform_2(%arg0: i32) -> (i32, i32, i32) {
    %c0_i32 = arith.constant 0 : i32
    %c0_i32_0 = arith.constant 0 : i32
    %c0_i32_1 = arith.constant 0 : i32
    return %c0_i32, %arg0, %c0_i32_0 : i32, i32, i32
  }
  func.func @transform_3(%arg0: i32) -> (i32, i32, i32) {
    %c0_i32 = arith.constant 0 : i32
    %c0_i32_0 = arith.constant 0 : i32
    %c0_i32_1 = arith.constant 0 : i32
    return %c0_i32, %arg0, %c0_i32_0 : i32, i32, i32
  }
}

</mosaic_0001>

<bundles_post_ra>
// kernel: tpu_custom_call.1
= control target key start
LH: loop header
LB: loop body
LE: loop exit
PB: predicated region body
PF: predicated region fallthrough
CT: control target
= control target key end

     0   :  { %9 = vsyncpa [#allocation3], 0  ;;  %s2700_s0 = inlined_call_operand.vmem [shape: f32[256,48], index: 0, kind: input, shape index: {}]   ;;  %s2701_s1 = inlined_call_operand.vmem [shape: f32[6,48,128], index: 1, kind: input, shape index: {}]   ;;  %s2702_s2 = inlined_call_operand.hbm [shape: f32[4,256,128], index: 2, kind: output, shape index: {0}]   ;;  %s2703_s3 = inlined_call_operand.hbm [shape: f32[2,256,128], index: 3, kind: output, shape index: {1}]  }
   0x1   :  { %11 = vsyncpa [#allocation3 + $0x1], 0 }
   0x2   :  { %12 = vsyncpa [#allocation5], 0 }
   0x3   :  { %14 = vsyncpa [#allocation5 + $0x1], 0  ;;  %s2135_s12 = smov 0   ;;  %s2137_s13 = smov 0  }
   0x4   :  { %s2139_s14 = smov 0   ;;  %s2141_s15 = smov 0  }
   0x5 LB: > { %s2156_s16 = sadd.s32 4294967295, %s2099_s15   ;;  %s1435_s17 = sadd.s32 4294967294, %s2099_s15   ;;  %s2099_s15 = sphi %s2141_s15, %s2709_s15   ;;  %s2095_s14 = sphi %s2139_s14, %s2708_s14   ;;  %s2091_s13 = sphi %s2137_s13, %s2707_s13   ;;  %s2087_s12 = sphi %s2135_s12, %s2706_s12  }
   0x6   : > { %s2160_s18 = sadd.s32 1, %s2099_s15   ;;  %s74_s19 = sadd.s32 1, %s2095_s14 }
   0x7   : > { %s71_s20 = ssub.s32 %s2099_s15, %s2160_s18  ;;  %p84_p0 = scmp.ne.s32.totalorder %s2095_s14, %s2091_s13 }
   0x8   : > { %p72_p1 = scmp.eq.s32.totalorder %s71_s20, 0  ;;  %p85_p2 = scmp.eq.s32.totalorder %s2156_s16, 1 }
   0x9   : > { %p90_p3 = scmp.ne.s32.totalorder %s2091_s13, %s2087_s12  ;;  %p91_p4 = scmp.eq.s32.totalorder %s1435_s17, 1 }
   0xa   : > { %s2171_s21 = scalar_select %p72_p1, %s2095_s14, %s74_s19  }
   0xb   : > { %p2173_p5 = por %p85_p2, %p84_p0  ;;  %p2177_p6 = por %p91_p4, %p90_p3 }
   0xc   : > { %p1438_p7 = scmp.ge.s32.totalorder %s2099_s15, 1  ;;  %p147_p8 = scmp.lt.s32.totalorder %s2099_s15, 3 }
   0xe   : > { %p148_p9 = pnand %p1438_p7, %p147_p8 }
   0xf   : > { %s1441_s30 = sshll.u32 (!%p148_p9), %s2156_s16, 4  ;;  %s2538_s29 = sand.u32 (!%p148_p9), 1, %s2091_s13  }
  0x10   : > { %151 = sbr.rel (%p148_p9) target bundleno = 341 (0x155), region = 28  ;;  %p177_p10 = scmp.lt.s32.totalorder (!%p148_p9), %s1441_s30, 31 }
  0x11   : > { %s1440_s6 = sshll.u32 (!%p148_p9), %s2538_s29, 8  ;;  %s1261_s8 = scalar_lea.sflag (!%p148_p9), [#allocation3], %s2538_s29 }
  0x12   : > { %s2608_s7 = scalar_lea.vmem (!%p148_p9), [#allocation4], %s1440_s6  ;;  %s1266_s9 = scalar_lea.sflag (!%p148_p9), [#allocation5], %s2538_s29 }
  0x15   : > { %v205_v0 = vld [vmem:[%s2701_s1 + $0x28] sm:$0xff]  ;;  %v1464_v1 = vld [vmem:[%s2701_s1 + $0x58] sm:$0xff]  ;;  %v204_v2 = vld [vmem:[%s2701_s1 + $0x20] sm:$0xff]  ;;  %s2711_s30 = smov (!%p177_p10, %s1441_s30), 31  ;;  %vm206_vm0 = vcmask 392192  }
  0x16   : > { %1775 = vmatprep.subr.mxu0 %v205_v0  ;;  %1811 = vmatprep.subr.mxu1 %v1464_v1  ;;  %v1463_v3 = vld [vmem:[%s2701_s1 + $0x50] sm:$0xff]  ;;  %v203_v4 = vld [vmem:[%s2701_s1 + $0x18] sm:$0xff]  ;;  %v1462_v5 = vld [vmem:[%s2701_s1 + $0x48] sm:$0xff]  ;;  %s1442_s20 = sshll.u32 %s2711_s30, 3  ;;  %s1439_s30 = sshll.u32 %s2538_s29, 9 }
  0x17   : > { %1776 = vmatpush3.msra.mxu0 %v205_v0  ;;  %1812 = vmatpush3.msra.mxu1 %v1464_v1  ;;  %v202_v6 = vld [vmem:[%s2701_s1 + $0x10] sm:$0xff]  ;;  %v1461_v7 = vld [vmem:[%s2701_s1 + $0x40] sm:$0xff]  ;;  %v201_v8 = vld [vmem:[%s2701_s1 + $0x8] sm:$0xff]  ;;  %s2217_s4 = scalar_lea.vmem %s2700_s0, %s1442_s20  ;;  %s2541_s5 = scalar_lea.vmem [#allocation2], %s1439_s30 }
  0x18   : > { %1777 = vmatprep.subr.mxu0 %v204_v2  ;;  %1813 = vmatprep.subr.mxu1 %v1463_v3  ;;  %v1460_v9 = vld [vmem:[%s2701_s1 + $0x38] sm:$0xff]  ;;  %v200_v10 = vld [vmem:[%s2701_s1] sm:$0xff]  ;;  %v1459_v11 = vld [vmem:[%s2701_s1 + $0x30] sm:$0xff] }
  0x19   : > { %1778 = vmatpush3.msra.mxu0 %v204_v2  ;;  %1814 = vmatpush3.msra.mxu1 %v1463_v3  ;;  %v2226_v12 = vld [vmem:[%s2217_s4] sm:$0xff]  ;;  %v2229_v13 = vld [vmem:[%s2217_s4 + $0x8] sm:$0xff]  ;;  %v1540_v15 = vld [vmem:[%s2701_s1 + $0xb8] sm:$0xff] }
  0x1a   : > { %1779 = vmatprep.subr.mxu0 %v203_v4  ;;  %1815 = vmatprep.subr.mxu1 %v1462_v5  ;;  %v1502_v14 = vld [vmem:[%s2701_s1 + $0x88] sm:$0xff]  ;;  %v2246_v16 = vld [vmem:[%s2217_s4 + $0x10] sm:$0xff]  ;;  %v2249_v17 = vld [vmem:[%s2217_s4 + $0x18] sm:$0xff] }
  0x1b   : > { %1780 = vmatpush3.msra.mxu0 %v203_v4  ;;  %1816 = vmatpush3.msra.mxu1 %v1462_v5  ;;  %v1501_v18 = vld [vmem:[%s2701_s1 + $0x80] sm:$0xff]  ;;  %v1539_v19 = vld [vmem:[%s2701_s1 + $0xb0] sm:$0xff]  ;;  %v2269_v21 = vld [vmem:[%s2217_s4 + $0x28] sm:$0xff] }
  0x1c   : > { %1781 = vmatprep.subr.mxu0 %v202_v6  ;;  %1817 = vmatprep.subr.mxu1 %v1461_v7  ;;  %v2262_v20 = vld [vmem:[%s2217_s4 + $0x20] sm:$0xff]  ;;  %v2276_v22 = vld [vmem:[%s2217_s4 + $0x30] sm:$0xff]  ;;  %v1500_v23 = vld [vmem:[%s2701_s1 + $0x78] sm:$0xff] }
  0x1d   : > { %1782 = vmatpush3.msra.mxu0 %v202_v6  ;;  %1818 = vmatpush3.msra.mxu1 %v1461_v7  ;;  %v1538_v24 = vld [vmem:[%s2701_s1 + $0xa8] sm:$0xff]  ;;  %v2293_v25 = vld [vmem:[%s2217_s4 + $0x38] sm:$0xff]  ;;  %v2296_v26 = vld [vmem:[%s2217_s4 + $0x40] sm:$0xff] }
  0x1e   : > { %1783 = vmatprep.subr.mxu0 %v201_v8  ;;  %1819 = vmatprep.subr.mxu1 %v1460_v9  ;;  %v1499_v27 = vld [vmem:[%s2701_s1 + $0x70] sm:$0xff]  ;;  %v1537_v28 = vld [vmem:[%s2701_s1 + $0xa0] sm:$0xff]  ;;  %v2313_v29 = vld [vmem:[%s2217_s4 + $0x48] sm:$0xff] }
  0x1f   : > { %1784 = vmatpush3.msra.mxu0 %v201_v8  ;;  %1820 = vmatpush3.msra.mxu1 %v1460_v9  ;;  %v2316_v30 = vld [vmem:[%s2217_s4 + $0x50] sm:$0xff]  ;;  %v1498_v31 = vld [vmem:[%s2701_s1 + $0x68] sm:$0xff]  ;;  %v1536_v32 = vld [vmem:[%s2701_s1 + $0x98] sm:$0xff] }
  0x20   : > { %1785 = vmatprep.subr.mxu0 %v200_v10  ;;  %1821 = vmatprep.subr.mxu1 %v1459_v11  ;;  %v2333_v33 = vld [vmem:[%s2217_s4 + $0x58] sm:$0xff]  ;;  %v2336_v34 = vld [vmem:[%s2217_s4 + $0x60] sm:$0xff]  ;;  %v1535_v36 = vld [vmem:[%s2701_s1 + $0x90] sm:$0xff] }
  0x21   : > { %1786 = vmatpush3.msra.mxu0 %v200_v10  ;;  %1787 = vmatprep.mubr.msk.f32.mxu0 %vm206_vm0, %v2226_v12  ;;  %v1497_v35 = vld [vmem:[%s2701_s1 + $0x60] sm:$0xff]  ;;  %v2353_v37 = vld [vmem:[%s2217_s4 + $0x68] sm:$0xff]  ;;  %v2356_v38 = vld [vmem:[%s2217_s4 + $0x70] sm:$0xff] }
  0x22   : > { %1822 = vmatpush3.msra.mxu1 %v1459_v11  ;;  %1823 = vmatprep.mubr.msk.f32.mxu1 %vm206_vm0, %v2226_v12  ;;  %v1578_v39 = vld [vmem:[%s2701_s1 + $0xe8] sm:$0xff]  ;;  %v1600_v40 = vld [vmem:[%s2701_s1 + $0x118] sm:$0xff]  ;;  %v1577_v42 = vld [vmem:[%s2701_s1 + $0xe0] sm:$0xff] }
  0x23   : > { %1788 = vmatmul.mubr.msk.f32.vlgmr.msra.gmra.mxu0 %vm206_vm0, %v2229_v13  ;;  %1824 = vmatmul.mubr.msk.f32.vlgmr.msra.gmra.mxu1 %vm206_vm0, %v2229_v13  ;;  %v2373_v41 = vld [vmem:[%s2217_s4 + $0x78] sm:$0xff]  ;;  %v1599_v43 = vld [vmem:[%s2701_s1 + $0x110] sm:$0xff]  ;;  %v1598_v45 = vld [vmem:[%s2701_s1 + $0x108] sm:$0xff] }
  0x24   : > { %1847 = vmatprep.subr.mxu0 %v1502_v14  ;;  %1883 = vmatprep.subr.mxu1 %v1540_v15  ;;  %v1576_v44 = vld [vmem:[%s2701_s1 + $0xd8] sm:$0xff]  ;;  %v1575_v46 = vld [vmem:[%s2701_s1 + $0xd0] sm:$0xff]  ;;  %v1597_v47 = vld [vmem:[%s2701_s1 + $0x100] sm:$0xff] }
  0x25   : > { %1848 = vmatpush3.msra.mxu0 %v1502_v14  ;;  %1884 = vmatpush3.msra.mxu1 %v1540_v15  ;;  %v1574_v48 = vld [vmem:[%s2701_s1 + $0xc8] sm:$0xff]  ;;  %v1596_v49 = vld [vmem:[%s2701_s1 + $0xf8] sm:$0xff]  ;;  %v1573_v50 = vld [vmem:[%s2701_s1 + $0xc0] sm:$0xff] }
  0x26   : > { %1790 = vmatprep.mubr.msk.f32.mxu0 %vm206_vm0, %v2246_v16  ;;  %1826 = vmatprep.mubr.msk.f32.mxu1 %vm206_vm0, %v2246_v16  ;;  %v1595_v51 = vld [vmem:[%s2701_s1 + $0xf0] sm:$0xff] }
  0x27   : > { %1791 = vmatmul.mubr.msk.f32.gmra.mxu0 %vm206_vm0, %v2249_v17  ;;  %1827 = vmatmul.mubr.msk.f32.gmra.mxu1 %vm206_vm0, %v2249_v17 }
  0x28   : > { %1849 = vmatprep.subr.mxu0 %v1501_v18  ;;  %1885 = vmatprep.subr.mxu1 %v1539_v19 }
  0x29   : > { %1793 = vmatprep.mubr.msk.f32.mxu0 %vm206_vm0, %v2262_v20  ;;  %1829 = vmatprep.mubr.msk.f32.mxu1 %vm206_vm0, %v2262_v20 }
  0x2a   : > { %1850 = vmatpush3.msra.mxu0 %v1501_v18  ;;  %1886 = vmatpush3.msra.mxu1 %v1539_v19 }
  0x2b   : > { %1794 = vmatmul.mubr.msk.f32.gmra.mxu0 %vm206_vm0, %v2269_v21  ;;  %1830 = vmatmul.mubr.msk.f32.gmra.mxu1 %vm206_vm0, %v2269_v21 }
  0x2c   : > { %1796 = vmatprep.mubr.msk.f32.mxu0 %vm206_vm0, %v2276_v22  ;;  %1832 = vmatprep.mubr.msk.f32.mxu1 %vm206_vm0, %v2276_v22 }
  0x2d   : > { %1851 = vmatprep.subr.mxu0 %v1500_v23  ;;  %1887 = vmatprep.subr.mxu1 %v1538_v24 }
  0x2e   : > { %1852 = vmatpush3.msra.mxu0 %v1500_v23  ;;  %1888 = vmatpush3.msra.mxu1 %v1538_v24 }
  0x2f   : > { %1797 = vmatmul.mubr.msk.f32.gmra.mxu0 %vm206_vm0, %v2293_v25  ;;  %1833 = vmatmul.mubr.msk.f32.gmra.mxu1 %vm206_vm0, %v2293_v25 }
  0x30   : > { %1799 = vmatprep.mubr.msk.f32.mxu0 %vm206_vm0, %v2296_v26  ;;  %1835 = vmatprep.mubr.msk.f32.mxu1 %vm206_vm0, %v2296_v26 }
  0x31   : > { %1853 = vmatprep.subr.mxu0 %v1499_v27  ;;  %1889 = vmatprep.subr.mxu1 %v1537_v28 }
  0x32   : > { %1854 = vmatpush3.msra.mxu0 %v1499_v27  ;;  %1890 = vmatpush3.msra.mxu1 %v1537_v28 }
  0x33   : > { %1800 = vmatmul.mubr.msk.f32.gmra.mxu0 %vm206_vm0, %v2313_v29  ;;  %1836 = vmatmul.mubr.msk.f32.gmra.mxu1 %vm206_vm0, %v2313_v29 }
  0x34   : > { %1802 = vmatprep.mubr.msk.f32.mxu0 %vm206_vm0, %v2316_v30  ;;  %1838 = vmatprep.mubr.msk.f32.mxu1 %vm206_vm0, %v2316_v30 }
  0x35   : > { %1855 = vmatprep.subr.mxu0 %v1498_v31  ;;  %1891 = vmatprep.subr.mxu1 %v1536_v32 }
  0x36   : > { %1856 = vmatpush3.msra.mxu0 %v1498_v31  ;;  %1892 = vmatpush3.msra.mxu1 %v1536_v32 }
  0x37   : > { %1803 = vmatmul.mubr.msk.f32.gmra.mxu0 %vm206_vm0, %v2333_v33  ;;  %1839 = vmatmul.mubr.msk.f32.gmra.mxu1 %vm206_vm0, %v2333_v33 }
  0x38   : > { %1805 = vmatprep.mubr.msk.f32.mxu0 %vm206_vm0, %v2336_v34  ;;  %1841 = vmatprep.mubr.msk.f32.mxu1 %vm206_vm0, %v2336_v34 }
  0x39   : > { %1857 = vmatprep.subr.mxu0 %v1497_v35  ;;  %1893 = vmatprep.subr.mxu1 %v1535_v36 }
  0x3a   : > { %1858 = vmatpush3.msra.mxu0 %v1497_v35  ;;  %1894 = vmatpush3.msra.mxu1 %v1535_v36 }
  0x3b   : > { %1806 = vmatmul.mubr.msk.f32.gmra.mxu0 %vm206_vm0, %v2353_v37  ;;  %1842 = vmatmul.mubr.msk.f32.gmra.mxu1 %vm206_vm0, %v2353_v37 }
  0x3c   : > { %1808 = vmatprep.mubr.msk.f32.mxu0 %vm206_vm0, %v2356_v38  ;;  %1844 = vmatprep.mubr.msk.f32.mxu1 %vm206_vm0, %v2356_v38 }
  0x3d   : > { %1919 = vmatprep.subr.mxu0 %v1578_v39  ;;  %1955 = vmatprep.subr.mxu1 %v1600_v40 }
  0x3f   : > { %1809 = vmatmul.mubr.msk.f32.gmra.mxu0 %vm206_vm0, %v2373_v41  ;;  %1845 = vmatmul.mubr.msk.f32.gmra.mxu1 %vm206_vm0, %v2373_v41 }
  0x40   : > { %1859 = vmatprep.mubr.msk.f32.mxu0 %vm206_vm0, %v2226_v12  ;;  %1895 = vmatprep.mubr.msk.f32.mxu1 %vm206_vm0, %v2226_v12 }
  0x43   : > { %1860 = vmatmul.mubr.msk.f32.vlgmr.msra.gmra.mxu0 %vm206_vm0, %v2229_v13  ;;  %1896 = vmatmul.mubr.msk.f32.vlgmr.msra.gmra.mxu1 %vm206_vm0, %v2229_v13 }
  0x44   : > { %1920 = vmatpush3.msra.mxu0 %v1578_v39  ;;  %1956 = vmatpush3.msra.mxu1 %v1600_v40 }
  0x45   : > { %1862 = vmatprep.mubr.msk.f32.mxu0 %vm206_vm0, %v2246_v16  ;;  %1898 = vmatprep.mubr.msk.f32.mxu1 %vm206_vm0, %v2246_v16 }
  0x46   : > { %1921 = vmatprep.subr.mxu0 %v1577_v42  ;;  %1957 = vmatprep.subr.mxu1 %v1599_v43 }
  0x47   : > { %1863 = vmatmul.mubr.msk.f32.gmra.mxu0 %vm206_vm0, %v2249_v17  ;;  %1899 = vmatmul.mubr.msk.f32.gmra.mxu1 %vm206_vm0, %v2249_v17 }
  0x48   : > { %1865 = vmatprep.mubr.msk.f32.mxu0 %vm206_vm0, %v2262_v20  ;;  %1901 = vmatprep.mubr.msk.f32.mxu1 %vm206_vm0, %v2262_v20 }
  0x49   : > { %1922 = vmatpush3.msra.mxu0 %v1577_v42  ;;  %1958 = vmatpush3.msra.mxu1 %v1599_v43 }
  0x4a   : > { %1923 = vmatprep.subr.mxu0 %v1576_v44  ;;  %1959 = vmatprep.subr.mxu1 %v1598_v45 }
  0x4b   : > { %1866 = vmatmul.mubr.msk.f32.gmra.mxu0 %vm206_vm0, %v2269_v21  ;;  %1902 = vmatmul.mubr.msk.f32.gmra.mxu1 %vm206_vm0, %v2269_v21 }
  0x4c   : > { %1868 = vmatprep.mubr.msk.f32.mxu0 %vm206_vm0, %v2276_v22  ;;  %1904 = vmatprep.mubr.msk.f32.mxu1 %vm206_vm0, %v2276_v22 }
  0x4d   : > { %1924 = vmatpush3.msra.mxu0 %v1576_v44  ;;  %1960 = vmatpush3.msra.mxu1 %v1598_v45 }
  0x4e   : > { %1925 = vmatprep.subr.mxu0 %v1575_v46  ;;  %1961 = vmatprep.subr.mxu1 %v1597_v47 }
  0x4f   : > { %1869 = vmatmul.mubr.msk.f32.gmra.mxu0 %vm206_vm0, %v2293_v25  ;;  %1905 = vmatmul.mubr.msk.f32.gmra.mxu1 %vm206_vm0, %v2293_v25 }
  0x50   : > { %1871 = vmatprep.mubr.msk.f32.mxu0 %vm206_vm0, %v2296_v26  ;;  %1907 = vmatprep.mubr.msk.f32.mxu1 %vm206_vm0, %v2296_v26 }
  0x51   : > { %1926 = vmatpush3.msra.mxu0 %v1575_v46  ;;  %1962 = vmatpush3.msra.mxu1 %v1597_v47 }
  0x52   : > { %1927 = vmatprep.subr.mxu0 %v1574_v48  ;;  %1963 = vmatprep.subr.mxu1 %v1596_v49 }
  0x53   : > { %1872 = vmatmul.mubr.msk.f32.gmra.mxu0 %vm206_vm0, %v2313_v29  ;;  %1908 = vmatmul.mubr.msk.f32.gmra.mxu1 %vm206_vm0, %v2313_v29 }
  0x54   : > { %1874 = vmatprep.mubr.msk.f32.mxu0 %vm206_vm0, %v2316_v30  ;;  %1910 = vmatprep.mubr.msk.f32.mxu1 %vm206_vm0, %v2316_v30 }
  0x55   : > { %1928 = vmatpush3.msra.mxu0 %v1574_v48  ;;  %1964 = vmatpush3.msra.mxu1 %v1596_v49 }
  0x56   : > { %1929 = vmatprep.subr.mxu0 %v1573_v50  ;;  %1965 = vmatprep.subr.mxu1 %v1595_v51 }
  0x57   : > { %1875 = vmatmul.mubr.msk.f32.gmra.mxu0 %vm206_vm0, %v2333_v33  ;;  %1911 = vmatmul.mubr.msk.f32.gmra.mxu1 %vm206_vm0, %v2333_v33 }
  0x58   : > { %1877 = vmatprep.mubr.msk.f32.mxu0 %vm206_vm0, %v2336_v34  ;;  %1913 = vmatprep.mubr.msk.f32.mxu1 %vm206_vm0, %v2336_v34 }
  0x59   : > { %1930 = vmatpush3.msra.mxu0 %v1573_v50  ;;  %1966 = vmatpush3.msra.mxu1 %v1595_v51 }
  0x5b   : > { %1878 = vmatmul.mubr.msk.f32.gmra.mxu0 %vm206_vm0, %v2353_v37  ;;  %1914 = vmatmul.mubr.msk.f32.gmra.mxu1 %vm206_vm0, %v2353_v37 }
  0x5c   : > { %1880 = vmatprep.mubr.msk.f32.mxu0 %vm206_vm0, %v2356_v38  ;;  %1916 = vmatprep.mubr.msk.f32.mxu1 %vm206_vm0, %v2356_v38 }
  0x5f   : > { %1881 = vmatmul.mubr.msk.f32.gmra.mxu0 %vm206_vm0, %v2373_v41  ;;  %1917 = vmatmul.mubr.msk.f32.gmra.mxu1 %vm206_vm0, %v2373_v41 }
  0x60   : > { %1931 = vmatprep.mubr.msk.f32.mxu0 %vm206_vm0, %v2226_v12  ;;  %1967 = vmatprep.mubr.msk.f32.mxu1 %vm206_vm0, %v2226_v12 }
  0x63   : > { %1932 = vmatmul.mubr.msk.f32.vlgmr.msra.gmra.mxu0 %vm206_vm0, %v2229_v13  ;;  %1968 = vmatmul.mubr.msk.f32.vlgmr.msra.gmra.mxu1 %vm206_vm0, %v2229_v13 }
  0x64   : > { %1934 = vmatprep.mubr.msk.f32.mxu0 %vm206_vm0, %v2246_v16  ;;  %1970 = vmatprep.mubr.msk.f32.mxu1 %vm206_vm0, %v2246_v16 }
  0x67   : > { %1935 = vmatmul.mubr.msk.f32.gmra.mxu0 %vm206_vm0, %v2249_v17  ;;  %1971 = vmatmul.mubr.msk.f32.gmra.mxu1 %vm206_vm0, %v2249_v17 }
  0x68   : > { %1937 = vmatprep.mubr.msk.f32.mxu0 %vm206_vm0, %v2262_v20  ;;  %1973 = vmatprep.mubr.msk.f32.mxu1 %vm206_vm0, %v2262_v20 }
  0x6b   : > { %1938 = vmatmul.mubr.msk.f32.gmra.mxu0 %vm206_vm0, %v2269_v21  ;;  %1974 = vmatmul.mubr.msk.f32.gmra.mxu1 %vm206_vm0, %v2269_v21 }
  0x6c   : > { %1940 = vmatprep.mubr.msk.f32.mxu0 %vm206_vm0, %v2276_v22  ;;  %1976 = vmatprep.mubr.msk.f32.mxu1 %vm206_vm0, %v2276_v22 }
  0x6f   : > { %1941 = vmatmul.mubr.msk.f32.gmra.mxu0 %vm206_vm0, %v2293_v25  ;;  %1977 = vmatmul.mubr.msk.f32.gmra.mxu1 %vm206_vm0, %v2293_v25 }
  0x70   : > { %1943 = vmatprep.mubr.msk.f32.mxu0 %vm206_vm0, %v2296_v26  ;;  %1979 = vmatprep.mubr.msk.f32.mxu1 %vm206_vm0, %v2296_v26 }
  0x73   : > { %1944 = vmatmul.mubr.msk.f32.gmra.mxu0 %vm206_vm0, %v2313_v29  ;;  %1980 = vmatmul.mubr.msk.f32.gmra.mxu1 %vm206_vm0, %v2313_v29 }
  0x74   : > { %1946 = vmatprep.mubr.msk.f32.mxu0 %vm206_vm0, %v2316_v30  ;;  %1982 = vmatprep.mubr.msk.f32.mxu1 %vm206_vm0, %v2316_v30 }
  0x77   : > { %1947 = vmatmul.mubr.msk.f32.gmra.mxu0 %vm206_vm0, %v2333_v33  ;;  %1983 = vmatmul.mubr.msk.f32.gmra.mxu1 %vm206_vm0, %v2333_v33 }
  0x78   : > { %1949 = vmatprep.mubr.msk.f32.mxu0 %vm206_vm0, %v2336_v34  ;;  %1985 = vmatprep.mubr.msk.f32.mxu1 %vm206_vm0, %v2336_v34 }
  0x7b   : > { %1950 = vmatmul.mubr.msk.f32.gmra.mxu0 %vm206_vm0, %v2353_v37  ;;  %1986 = vmatmul.mubr.msk.f32.gmra.mxu1 %vm206_vm0, %v2353_v37 }
  0x7c   : > { %1952 = vmatprep.mubr.msk.f32.mxu0 %vm206_vm0, %v2356_v38  ;;  %1988 = vmatprep.mubr.msk.f32.mxu1 %vm206_vm0, %v2356_v38 }
  0x7f   : > { %1953 = vmatmul.mubr.msk.f32.gmra.mxu0 %vm206_vm0, %v2373_v41  ;;  %1989 = vmatmul.mubr.msk.f32.gmra.mxu1 %vm206_vm0, %v2373_v41 }
  0xe3   : > { %v1789_v52 = vpop.f32.mrf.mxu0  ;;  %v1825_v53 = vpop.f32.mrf.mxu1 }
  0xe4   : > { %401 = vst [vmem:[%s2541_s5 + $0x8] sm:$0xff] %v1789_v52  ;;  %1482 = vst [vmem:[%s2541_s5 + $0x88] sm:$0xff] %v1825_v53 }
  0xe5   : > { %v321_v54 = vpop.f32.mrf.mxu0  ;;  %v489_v55 = vpop.f32.mrf.mxu1 }
  0xe6   : > { %400 = vst [vmem:[%s2541_s5] sm:$0xff] %v321_v54  ;;  %1481 = vst [vmem:[%s2541_s5 + $0x80] sm:$0xff] %v489_v55 }
  0xe7   : > { %v1792_v56 = vpop.f32.mrf.mxu0  ;;  %v1828_v57 = vpop.f32.mrf.mxu1 }
  0xe8   : > { %403 = vst [vmem:[%s2541_s5 + $0x18] sm:$0xff] %v1792_v56  ;;  %1484 = vst [vmem:[%s2541_s5 + $0x98] sm:$0xff] %v1828_v57 }
  0xe9   : > { %v331_v58 = vpop.f32.mrf.mxu0  ;;  %v499_v59 = vpop.f32.mrf.mxu1 }
  0xea   : > { %402 = vst [vmem:[%s2541_s5 + $0x10] sm:$0xff] %v331_v58  ;;  %1483 = vst [vmem:[%s2541_s5 + $0x90] sm:$0xff] %v499_v59 }
  0xeb   : > { %v1795_v60 = vpop.f32.mrf.mxu0  ;;  %v1831_v61 = vpop.f32.mrf.mxu1 }
  0xec   : > { %405 = vst [vmem:[%s2541_s5 + $0x28] sm:$0xff] %v1795_v60  ;;  %1486 = vst [vmem:[%s2541_s5 + $0xa8] sm:$0xff] %v1831_v61 }
  0xed   : > { %v341_v62 = vpop.f32.mrf.mxu0  ;;  %v509_v63 = vpop.f32.mrf.mxu1 }
  0xee   : > { %404 = vst [vmem:[%s2541_s5 + $0x20] sm:$0xff] %v341_v62  ;;  %1485 = vst [vmem:[%s2541_s5 + $0xa0] sm:$0xff] %v509_v63 }
  0xef   : > { %v1798_v0 = vpop.f32.mrf.mxu0  ;;  %v1834_v1 = vpop.f32.mrf.mxu1 }
  0xf0   : > { %407 = vst [vmem:[%s2541_s5 + $0x38] sm:$0xff] %v1798_v0  ;;  %1488 = vst [vmem:[%s2541_s5 + $0xb8] sm:$0xff] %v1834_v1 }
  0xf1   : > { %v351_v2 = vpop.f32.mrf.mxu0  ;;  %v519_v3 = vpop.f32.mrf.mxu1 }
  0xf2   : > { %406 = vst [vmem:[%s2541_s5 + $0x30] sm:$0xff] %v351_v2  ;;  %1487 = vst [vmem:[%s2541_s5 + $0xb0] sm:$0xff] %v519_v3 }
  0xf3   : > { %v1801_v4 = vpop.f32.mrf.mxu0  ;;  %v1837_v5 = vpop.f32.mrf.mxu1 }
  0xf4   : > { %409 = vst [vmem:[%s2541_s5 + $0x48] sm:$0xff] %v1801_v4  ;;  %1490 = vst [vmem:[%s2541_s5 + $0xc8] sm:$0xff] %v1837_v5 }
  0xf5   : > { %v361_v6 = vpop.f32.mrf.mxu0  ;;  %v529_v7 = vpop.f32.mrf.mxu1 }
  0xf6   : > { %408 = vst [vmem:[%s2541_s5 + $0x40] sm:$0xff] %v361_v6  ;;  %1489 = vst [vmem:[%s2541_s5 + $0xc0] sm:$0xff] %v529_v7 }
  0xf7   : > { %v1804_v8 = vpop.f32.mrf.mxu0  ;;  %v1840_v9 = vpop.f32.mrf.mxu1 }
  0xf8   : > { %411 = vst [vmem:[%s2541_s5 + $0x58] sm:$0xff] %v1804_v8  ;;  %1492 = vst [vmem:[%s2541_s5 + $0xd8] sm:$0xff] %v1840_v9 }
  0xf9   : > { %v371_v10 = vpop.f32.mrf.mxu0  ;;  %v539_v11 = vpop.f32.mrf.mxu1 }
  0xfa   : > { %410 = vst [vmem:[%s2541_s5 + $0x50] sm:$0xff] %v371_v10  ;;  %1491 = vst [vmem:[%s2541_s5 + $0xd0] sm:$0xff] %v539_v11 }
  0xfb   : > { %v1807_v12 = vpop.f32.mrf.mxu0  ;;  %v1843_v13 = vpop.f32.mrf.mxu1 }
  0xfc   : > { %413 = vst [vmem:[%s2541_s5 + $0x68] sm:$0xff] %v1807_v12  ;;  %1494 = vst [vmem:[%s2541_s5 + $0xe8] sm:$0xff] %v1843_v13 }
  0xfd   : > { %v381_v14 = vpop.f32.mrf.mxu0  ;;  %v549_v15 = vpop.f32.mrf.mxu1 }
  0xfe   : > { %412 = vst [vmem:[%s2541_s5 + $0x60] sm:$0xff] %v381_v14  ;;  %1493 = vst [vmem:[%s2541_s5 + $0xe0] sm:$0xff] %v549_v15 }
  0xff   : > { %v1810_v16 = vpop.f32.mrf.mxu0  ;;  %v1846_v17 = vpop.f32.mrf.mxu1 }
 0x100   : > { %415 = vst [vmem:[%s2541_s5 + $0x78] sm:$0xff] %v1810_v16  ;;  %1496 = vst [vmem:[%s2541_s5 + $0xf8] sm:$0xff] %v1846_v17 }
 0x101   : > { %v391_v18 = vpop.f32.mrf.mxu0  ;;  %v559_v19 = vpop.f32.mrf.mxu1 }
 0x102   : > { %414 = vst [vmem:[%s2541_s5 + $0x70] sm:$0xff] %v391_v18  ;;  %1495 = vst [vmem:[%s2541_s5 + $0xf0] sm:$0xff] %v559_v19 }
 0x103   : > { %v1861_v20 = vpop.f32.mrf.mxu0  ;;  %v1897_v21 = vpop.f32.mrf.mxu1 }
 0x104   : > { %1520 = vst [vmem:[%s2541_s5 + $0x108] sm:$0xff] %v1861_v20  ;;  %1558 = vst [vmem:[%s2541_s5 + $0x188] sm:$0xff] %v1897_v21 }
 0x105   : > { %v658_v22 = vpop.f32.mrf.mxu0  ;;  %v827_v23 = vpop.f32.mrf.mxu1 }
 0x106   : > { %1519 = vst [vmem:[%s2541_s5 + $0x100] sm:$0xff] %v658_v22  ;;  %1557 = vst [vmem:[%s2541_s5 + $0x180] sm:$0xff] %v827_v23 }
 0x107   : > { %v1864_v24 = vpop.f32.mrf.mxu0  ;;  %v1900_v25 = vpop.f32.mrf.mxu1 }
 0x108   : > { %1522 = vst [vmem:[%s2541_s5 + $0x118] sm:$0xff] %v1864_v24  ;;  %1560 = vst [vmem:[%s2541_s5 + $0x198] sm:$0xff] %v1900_v25 }
 0x109   : > { %v668_v26 = vpop.f32.mrf.mxu0  ;;  %v837_v27 = vpop.f32.mrf.mxu1 }
 0x10a   : > { %1521 = vst [vmem:[%s2541_s5 + $0x110] sm:$0xff] %v668_v26  ;;  %1559 = vst [vmem:[%s2541_s5 + $0x190] sm:$0xff] %v837_v27 }
 0x10b   : > { %v1867_v28 = vpop.f32.mrf.mxu0  ;;  %v1903_v29 = vpop.f32.mrf.mxu1 }
 0x10c   : > { %1524 = vst [vmem:[%s2541_s5 + $0x128] sm:$0xff] %v1867_v28  ;;  %1562 = vst [vmem:[%s2541_s5 + $0x1a8] sm:$0xff] %v1903_v29 }
 0x10d   : > { %v678_v30 = vpop.f32.mrf.mxu0  ;;  %v847_v31 = vpop.f32.mrf.mxu1 }
 0x10e   : > { %1523 = vst [vmem:[%s2541_s5 + $0x120] sm:$0xff] %v678_v30  ;;  %1561 = vst [vmem:[%s2541_s5 + $0x1a0] sm:$0xff] %v847_v31 }
 0x10f   : > { %v1870_v32 = vpop.f32.mrf.mxu0  ;;  %v1906_v33 = vpop.f32.mrf.mxu1 }
 0x110   : > { %1526 = vst [vmem:[%s2541_s5 + $0x138] sm:$0xff] %v1870_v32  ;;  %1564 = vst [vmem:[%s2541_s5 + $0x1b8] sm:$0xff] %v1906_v33 }
 0x111   : > { %v688_v34 = vpop.f32.mrf.mxu0  ;;  %v857_v35 = vpop.f32.mrf.mxu1 }
 0x112   : > { %1525 = vst [vmem:[%s2541_s5 + $0x130] sm:$0xff] %v688_v34  ;;  %1563 = vst [vmem:[%s2541_s5 + $0x1b0] sm:$0xff] %v857_v35 }
 0x113   : > { %v1873_v36 = vpop.f32.mrf.mxu0  ;;  %v1909_v37 = vpop.f32.mrf.mxu1 }
 0x114   : > { %1528 = vst [vmem:[%s2541_s5 + $0x148] sm:$0xff] %v1873_v36  ;;  %1566 = vst [vmem:[%s2541_s5 + $0x1c8] sm:$0xff] %v1909_v37 }
 0x115   : > { %v698_v38 = vpop.f32.mrf.mxu0  ;;  %v867_v39 = vpop.f32.mrf.mxu1 }
 0x116   : > { %1527 = vst [vmem:[%s2541_s5 + $0x140] sm:$0xff] %v698_v38  ;;  %1565 = vst [vmem:[%s2541_s5 + $0x1c0] sm:$0xff] %v867_v39 }
 0x117   : > { %v1876_v40 = vpop.f32.mrf.mxu0  ;;  %v1912_v41 = vpop.f32.mrf.mxu1 }
 0x118   : > { %1530 = vst [vmem:[%s2541_s5 + $0x158] sm:$0xff] %v1876_v40  ;;  %1568 = vst [vmem:[%s2541_s5 + $0x1d8] sm:$0xff] %v1912_v41 }
 0x119   : > { %v708_v42 = vpop.f32.mrf.mxu0  ;;  %v877_v43 = vpop.f32.mrf.mxu1 }
 0x11a   : > { %1529 = vst [vmem:[%s2541_s5 + $0x150] sm:$0xff] %v708_v42  ;;  %1567 = vst [vmem:[%s2541_s5 + $0x1d0] sm:$0xff] %v877_v43 }
 0x11b   : > { %v1879_v44 = vpop.f32.mrf.mxu0  ;;  %v1915_v45 = vpop.f32.mrf.mxu1 }
 0x11c   : > { %1532 = vst [vmem:[%s2541_s5 + $0x168] sm:$0xff] %v1879_v44  ;;  %1570 = vst [vmem:[%s2541_s5 + $0x1e8] sm:$0xff] %v1915_v45 }
 0x11d   : > { %v718_v46 = vpop.f32.mrf.mxu0  ;;  %v887_v47 = vpop.f32.mrf.mxu1 }
 0x11e   : > { %1531 = vst [vmem:[%s2541_s5 + $0x160] sm:$0xff] %v718_v46  ;;  %1569 = vst [vmem:[%s2541_s5 + $0x1e0] sm:$0xff] %v887_v47 }
 0x11f   : > { %v1882_v48 = vpop.f32.mrf.mxu0  ;;  %v1918_v49 = vpop.f32.mrf.mxu1 }
 0x120   : > { %1534 = vst [vmem:[%s2541_s5 + $0x178] sm:$0xff] %v1882_v48  ;;  %1572 = vst [vmem:[%s2541_s5 + $0x1f8] sm:$0xff] %v1918_v49 }
 0x121   : > { %v728_v50 = vpop.f32.mrf.mxu0  ;;  %v897_v51 = vpop.f32.mrf.mxu1 }
 0x122   : > { %1533 = vst [vmem:[%s2541_s5 + $0x170] sm:$0xff] %v728_v50  ;;  %1571 = vst [vmem:[%s2541_s5 + $0x1f0] sm:$0xff] %v897_v51 }
 0x123   : > { %v1933_v52 = vpop.f32.mrf.mxu0  ;;  %v1969_v53 = vpop.f32.mrf.mxu1 }
 0x124   : > { %1076 = vst [vmem:[%s2608_s7 + $0x8] sm:$0xff] %v1933_v52  ;;  %1618 = vst [vmem:[%s2608_s7 + $0x88] sm:$0xff] %v1969_v53 }
 0x125   : > { %v996_v54 = vpop.f32.mrf.mxu0  ;;  %v1164_v55 = vpop.f32.mrf.mxu1 }
 0x126   : > { %1075 = vst [vmem:[%s2608_s7] sm:$0xff] %v996_v54  ;;  %1617 = vst [vmem:[%s2608_s7 + $0x80] sm:$0xff] %v1164_v55 }
 0x127   : > { %v1936_v56 = vpop.f32.mrf.mxu0  ;;  %v1972_v57 = vpop.f32.mrf.mxu1 }
 0x128   : > { %1078 = vst [vmem:[%s2608_s7 + $0x18] sm:$0xff] %v1936_v56  ;;  %1620 = vst [vmem:[%s2608_s7 + $0x98] sm:$0xff] %v1972_v57 }
 0x129   : > { %v1006_v58 = vpop.f32.mrf.mxu0  ;;  %v1174_v59 = vpop.f32.mrf.mxu1 }
 0x12a   : > { %1077 = vst [vmem:[%s2608_s7 + $0x10] sm:$0xff] %v1006_v58  ;;  %1619 = vst [vmem:[%s2608_s7 + $0x90] sm:$0xff] %v1174_v59 }
 0x12b   : > { %v1939_v60 = vpop.f32.mrf.mxu0  ;;  %v1975_v61 = vpop.f32.mrf.mxu1 }
 0x12c   : > { %1080 = vst [vmem:[%s2608_s7 + $0x28] sm:$0xff] %v1939_v60  ;;  %1622 = vst [vmem:[%s2608_s7 + $0xa8] sm:$0xff] %v1975_v61 }
 0x12d   : > { %v1016_v62 = vpop.f32.mrf.mxu0  ;;  %v1184_v63 = vpop.f32.mrf.mxu1 }
 0x12e   : > { %1079 = vst [vmem:[%s2608_s7 + $0x20] sm:$0xff] %v1016_v62  ;;  %1621 = vst [vmem:[%s2608_s7 + $0xa0] sm:$0xff] %v1184_v63 }
 0x12f   : > { %v1942_v0 = vpop.f32.mrf.mxu0  ;;  %v1978_v1 = vpop.f32.mrf.mxu1 }
 0x130   : > { %1082 = vst [vmem:[%s2608_s7 + $0x38] sm:$0xff] %v1942_v0  ;;  %1624 = vst [vmem:[%s2608_s7 + $0xb8] sm:$0xff] %v1978_v1 }
 0x131   : > { %v1026_v2 = vpop.f32.mrf.mxu0  ;;  %v1194_v3 = vpop.f32.mrf.mxu1 }
 0x132   : > { %1081 = vst [vmem:[%s2608_s7 + $0x30] sm:$0xff] %v1026_v2  ;;  %1623 = vst [vmem:[%s2608_s7 + $0xb0] sm:$0xff] %v1194_v3 }
 0x133   : > { %v1945_v4 = vpop.f32.mrf.mxu0  ;;  %v1981_v5 = vpop.f32.mrf.mxu1 }
 0x134   : > { %1084 = vst [vmem:[%s2608_s7 + $0x48] sm:$0xff] %v1945_v4  ;;  %1626 = vst [vmem:[%s2608_s7 + $0xc8] sm:$0xff] %v1981_v5 }
 0x135   : > { %v1036_v6 = vpop.f32.mrf.mxu0  ;;  %v1204_v7 = vpop.f32.mrf.mxu1 }
 0x136   : > { %1083 = vst [vmem:[%s2608_s7 + $0x40] sm:$0xff] %v1036_v6  ;;  %1625 = vst [vmem:[%s2608_s7 + $0xc0] sm:$0xff] %v1204_v7 }
 0x137   : > { %v1948_v8 = vpop.f32.mrf.mxu0  ;;  %v1984_v9 = vpop.f32.mrf.mxu1 }
 0x138   : > { %1086 = vst [vmem:[%s2608_s7 + $0x58] sm:$0xff] %v1948_v8  ;;  %1628 = vst [vmem:[%s2608_s7 + $0xd8] sm:$0xff] %v1984_v9 }
 0x139   : > { %v1046_v10 = vpop.f32.mrf.mxu0  ;;  %v1214_v11 = vpop.f32.mrf.mxu1 }
 0x13a   : > { %1085 = vst [vmem:[%s2608_s7 + $0x50] sm:$0xff] %v1046_v10  ;;  %1627 = vst [vmem:[%s2608_s7 + $0xd0] sm:$0xff] %v1214_v11 }
 0x13b   : > { %v1951_v12 = vpop.f32.mrf.mxu0  ;;  %v1987_v13 = vpop.f32.mrf.mxu1 }
 0x13c   : > { %1088 = vst [vmem:[%s2608_s7 + $0x68] sm:$0xff] %v1951_v12  ;;  %1630 = vst [vmem:[%s2608_s7 + $0xe8] sm:$0xff] %v1987_v13 }
 0x13d   : > { %v1056_v14 = vpop.f32.mrf.mxu0  ;;  %v1224_v15 = vpop.f32.mrf.mxu1 }
 0x13e   : > { %1087 = vst [vmem:[%s2608_s7 + $0x60] sm:$0xff] %v1056_v14  ;;  %1629 = vst [vmem:[%s2608_s7 + $0xe0] sm:$0xff] %v1224_v15 }
 0x13f   : > { %v1954_v16 = vpop.f32.mrf.mxu0  ;;  %v1990_v17 = vpop.f32.mrf.mxu1 }
 0x140   : > { %1090 = vst [vmem:[%s2608_s7 + $0x78] sm:$0xff] %v1954_v16  ;;  %1632 = vst [vmem:[%s2608_s7 + $0xf8] sm:$0xff] %v1990_v17 }
 0x141   : > { %v1066_v18 = vpop.f32.mrf.mxu0  ;;  %v1234_v19 = vpop.f32.mrf.mxu1 }
 0x142   : > { %1089 = vst [vmem:[%s2608_s7 + $0x70] sm:$0xff] %v1066_v18  ;;  %1631 = vst [vmem:[%s2608_s7 + $0xf0] sm:$0xff] %v1234_v19 }
 0x143   : > { %s1641_s10 = sshll.u32 %s2156_s16, 11  ;;  %s1289_s11 = sshll.u32 %s2541_s5, 4  ;;  %s1290_s11 = int_to_ptr.vmem [resolvable:$true] %s1289_s11 }
 0x144   : > { %s1278_s20 = scalar_lea.hbm %s2702_s2, %s1641_s10  ;;  %s2101_s24 = smov 2048  }
 0x145   : > { %1991 = sst [smem:[#allocation7]] (%p2173_p5), %s2101_s24  ;;  %s2102_s25 = smov 4096  }
 0x146   : > { %1992 = sst [smem:[#allocation7 + $0x1]] (%p2173_p5), %s2102_s25  ;;  %s2103_s26 = smov 16  }
 0x147   : > { %1993 = sst [smem:[#allocation7 + $0x2]] (%p2173_p5), %s2103_s26  ;;  %s2104_s27 = smov 128  }
 0x148   : > { %1994 = sst [smem:[#allocation7 + $0x3]] (%p2173_p5), %s2104_s27  ;;  %s2105_s16 = smov 8  }
 0x149   : > { %1995 = sst [smem:[#allocation7 + $0x4]] (%p2173_p5), %s2104_s27  ;;  %s2106_s4 = smov 131072  }
 0x14a   : > { %1996 = sst [smem:[#allocation7 + $0x5]] (%p2173_p5), %s2105_s16  ;;  %s2107_s28 = smov 0  }
 0x14b   : > { %1997 = dma.general (%p2173_p5), %s1290_s11, 8192, %s1278_s20, %s1261_s8, %s2106_s4, [#allocation7], %s2107_s28, 0  }
 0x14c   : > { %s1317_s6 = scalar_lea.hbm %s2703_s3, %s1641_s10  ;;  %s1328_s17 = sshll.u32 %s2608_s7, 4  ;;  %s1329_s17 = int_to_ptr.vmem [resolvable:$true] %s1328_s17 }
 0x14d   : > { %s2108_s19 = smov 2048   ;;  %s2109_s24 = smov 4096  }
 0x14e   : > { %1998 = sst [smem:[#allocation9]] (%p2173_p5), %s2108_s19  ;;  %s2110_s8 = smov 16  }
 0x14f   : > { %1999 = sst [smem:[#allocation9 + $0x1]] (%p2173_p5), %s2109_s24  ;;  %s2111_s11 = smov 128  }
 0x150   : > { %2000 = sst [smem:[#allocation9 + $0x2]] (%p2173_p5), %s2110_s8  ;;  %s2112_s20 = smov 8  }
 0x151   : > { %2001 = sst [smem:[#allocation9 + $0x3]] (%p2173_p5), %s2111_s11  ;;  %s2113_s10 = smov 131072  }
 0x152   : > { %2002 = sst [smem:[#allocation9 + $0x4]] (%p2173_p5), %s2111_s11  ;;  %s2114_s7 = smov 0  }
 0x153   : > { %2003 = sst [smem:[#allocation9 + $0x5]] (%p2173_p5), %s2112_s20 }
 0x154   : > { %2004 = dma.general (%p2173_p5), %s1329_s17, 4096, %s1317_s6, %s1266_s9, %s2113_s10, [#allocation9], %s2114_s7, 0  }
 0x155 PF: > { %p2014_p11 = scmp.ge.s32.totalorder %s2099_s15, 2  ;;  %s1356_s25 = sand.u32 1, %s2087_s12  }
 0x156   : > { %s1357_s26 = scalar_lea.sflag [#allocation3], %s1356_s25 }
 0x157   : > { %p2008_p12 = pnand %p2014_p11, %p2177_p6 }
 0x159   : > { %p2009_p13 = pneg %p2008_p12 }
 0x15b   : > { %2078 = dma.done.wait (%p2009_p13), %s1357_s26, 8192  }
 0x15c   : > { %2080 = vsyncadd (%p2009_p13), %s1357_s26, 4294959104  ;;  %s1366_s27 = scalar_lea.sflag [#allocation5], %s1356_s25 }
 0x15d   : > { %2082 = dma.done.wait (%p2009_p13), %s1366_s27, 4096  }
 0x15e   : > { %2084 = vsyncadd (%p2009_p13), %s1366_s27, 4294963200  ;;  %p17_p0 = scmp.ge.s32.totalorder %s2160_s18, 4   ;;  %s2706_s12 = smov %s2091_s13 }
 0x15f   : > { %s2707_s13 = smov %s2095_s14  ;;  %s2708_s14 = smov %s2171_s21 }
 0x160   : > { %s2709_s15 = smov %s2160_s18  ;;  %19 = sbr.rel (!%p17_p0) target bundleno = 5 (0x5), region = 99 }
 0x165   :  { %1371 = vsyncpa [#allocation3], 1 }
 0x166   :  { %1373 = vsyncpa [#allocation3 + $0x1], 1 }
 0x167   :  { %1374 = vsyncpa [#allocation5], 1 }
 0x168   :  { %1376 = vsyncpa [#allocation5 + $0x1], 1 }

</bundles_post_ra>
